<compile_context>
chip_gen: v7x
topology: tpu7x:2x2x1
jax: 0.10.0
libtpu: 0.0.40
codegen_flags: <defaults>
</compile_context>

<pallas_src>
import functools

import jax
import jax.numpy as jnp
from jax.experimental import pallas as pl
from jax.experimental.pallas import tpu as pltpu


# ---------------------------------------------------------------------------
# Pallas kernel: hoisted input projection + unrolled LSTM recurrence + flattened FC.
#   x2_ref  : (T*B, F)   bf16, time-major padded input, row t*B + b == x[b, t, :]
#   wih_ref : (F, 4H)    bf16, transposed W_ih, columns pre-scaled by the gate scale vector
#   whh_ref : (H, 4H)    bf16, transposed W_hh, columns pre-scaled by the gate scale vector
#   b_ref   : (1, 4H)    f32, (b_ih + b_hh) pre-scaled by the gate scale vector
#   wfc_ref : (T*H, n_out) bf16, transposed FC weight; rows [t*H,(t+1)*H) match timestep t
#   bfc_ref : (1, n_out) f32, FC bias
#   out_ref : (B, n_out) f32
#   h_all_ref: (B, T*H)  f32 VMEM scratch, column block t*H:(t+1)*H holds h_t
# Gate order follows PyTorch: i, f, g, o.  The 0.5 pre-scale on i/f/o lanes is folded into
# the weights/bias, so sigmoid(z) = 0.5*tanh(z_scaled) + 0.5 and the tanh gate is just
# tanh(z) — a single full-width (4H-lane) tanh per step covers all four gates.
# ---------------------------------------------------------------------------
def lstm_fc_kernel(x2_ref, wih_ref, whh_ref, b_ref, wfc_ref, bfc_ref,
                   out_ref, h_all_ref, *, T, B):
    H = whh_ref.shape[0]
    whh = whh_ref[...]                      # (H, 4H) bf16, loaded once, live across the loop

    # Hoisted input projection for all timesteps: one matmul, off the serial chain.
    pre = (
        jnp.dot(x2_ref[...], wih_ref[...], preferred_element_type=jnp.float32)
        + b_ref[...]
    )                                       # (T*B, 4H) f32, already gate-pre-scaled

    h = jnp.zeros((B, H), jnp.float32)
    c = jnp.zeros((B, H), jnp.float32)
    for t in range(T):  # T is small & static: full unroll, all offsets compile-time constants.
        z = pre[t * B:(t + 1) * B, :] + jnp.dot(
            h.astype(jnp.bfloat16), whh, preferred_element_type=jnp.float32)
        th = jnp.tanh(z)                    # ONE full-vreg tanh covers all four gates
        i_g = 0.5 * th[:, 0 * H:1 * H] + 0.5
        f_g = 0.5 * th[:, 1 * H:2 * H] + 0.5
        g_g = th[:, 2 * H:3 * H]
        o_g = 0.5 * th[:, 3 * H:4 * H] + 0.5
        c = f_g * c + i_g * g_g
        h = o_g * jnp.tanh(c)
        h_all_ref[:, t * H:(t + 1) * H] = h  # cheap VMEM store, no register-level concat

    # Flattened FC, entirely outside the recurrence: (B, T*H) @ (T*H, n_out) + bias.
    out = (
        jnp.dot(h_all_ref[...].astype(jnp.bfloat16), wfc_ref[...],
                preferred_element_type=jnp.float32)
        + bfc_ref[...]
    )
    out_ref[...] = out.astype(out_ref.dtype)


# ---------------------------------------------------------------------------
# One-time parameter preparation (hoisted out of the per-call path).
# ---------------------------------------------------------------------------
def prepare_params(params):
    W_ih, W_hh, b_ih, b_hh, W_fc, b_fc = params
    H = W_hh.shape[1]
    n_out = W_fc.shape[0]
    # Gate pre-scale: 0.5 for sigmoid gates (i, f, o), 1.0 for the tanh gate (g).
    s = jnp.concatenate(
        [jnp.full((2 * H,), 0.5), jnp.full((H,), 1.0), jnp.full((H,), 0.5)]
    ).astype(jnp.float32)                                                      # (4H,)
    wih = (jnp.transpose(W_ih).astype(jnp.float32) * s[None, :]).astype(jnp.bfloat16)  # (F, 4H)
    whh = (jnp.transpose(W_hh).astype(jnp.float32) * s[None, :]).astype(jnp.bfloat16)  # (H, 4H)
    b = ((b_ih + b_hh).astype(jnp.float32) * s).reshape(1, 4 * H)              # (1, 4H) f32
    wfc = jnp.transpose(W_fc).astype(jnp.bfloat16)                             # (T*H, n_out)
    bfc = b_fc.reshape(1, n_out).astype(jnp.float32)                           # (1, n_out)
    return wih, whh, b, wfc, bfc


# ---------------------------------------------------------------------------
# Per-call wrapper: pad B to the 8-sublane boundary, relayout x (fusible into the call),
# then one pallas_call.
# ---------------------------------------------------------------------------
def lstm_forecaster_forward(x, prepped):
    """x: (B, T, F) float32, prepped from prepare_params(). Returns (B, n_outputs)."""
    wih, whh, b, wfc, bfc = prepped
    B, T, F = x.shape
    n_out = wfc.shape[1]
    TH = wfc.shape[0]                      # T * H
    B_pad = ((B + 7) // 8) * 8             # sublane-align the batch (zero rows appended)

    # Time-major, batch-padded, bf16, flattened to (T*B_pad, F).  Single producer
    # expression so XLA can fuse it into the pallas_call operand (allow_input_fusion).
    xt = jnp.swapaxes(x, 0, 1).astype(jnp.bfloat16)                      # (T, B, F)
    x2 = (jnp.zeros((T, B_pad, F), jnp.bfloat16)
          .at[:, :B, :].set(xt)
          .reshape(T * B_pad, F))                                        # (T*B_pad, F)

    kernel = functools.partial(lstm_fc_kernel, T=T, B=B_pad)
    vmem = pl.BlockSpec(memory_space=pltpu.MemorySpace.VMEM)
    out = pl.pallas_call(
        kernel,
        out_shape=jax.ShapeDtypeStruct((B_pad, n_out), jnp.float32),
        in_specs=[vmem] * 6,
        out_specs=vmem,
        scratch_shapes=[pltpu.VMEM((B_pad, TH), jnp.float32)],
        compiler_params=pltpu.CompilerParams(
            allow_input_fusion=[True, False, False, False, False, False],
            vmem_limit_bytes=32 * 1024 * 1024,
        ),
    )(x2, wih, whh, b, wfc, bfc)
    return out[:B]


# ---------------------------------------------------------------------------
# Pure-JAX reference (mirrors PyTorch nn.LSTM + nn.Linear semantics, f32)
# ---------------------------------------------------------------------------
def ref_forward(x, params):
    W_ih, W_hh, b_ih, b_hh, W_fc, b_fc = params
    B, T, F = x.shape
    H = W_hh.shape[1]
    h = jnp.zeros((B, H), jnp.float32)
    c = jnp.zeros((B, H), jnp.float32)
    hs = []
    for t in range(T):
        gates = x[:, t, :] @ W_ih.T + b_ih + h @ W_hh.T + b_hh
        i_g, f_g, g_g, o_g = jnp.split(gates, 4, axis=1)
        i_g = jax.nn.sigmoid(i_g)
        f_g = jax.nn.sigmoid(f_g)
        g_g = jnp.tanh(g_g)
        o_g = jax.nn.sigmoid(o_g)
        c = f_g * c + i_g * g_g
        h = o_g * jnp.tanh(c)
        hs.append(h)
    h_seq = jnp.stack(hs, axis=1).reshape(B, T * H)  # contiguous flatten, matches x.view(B, -1)
    return h_seq @ W_fc.T + b_fc


if __name__ == "__main__":
    # Module hyperparameters (small, consistent with the forward pass)
    B, T, F, H, N_OUT = 2, 8, 4, 32, 8  # batch, sequence_len, n_features, n_hidden, n_outputs

    key = jax.random.PRNGKey(0)
    ks = jax.random.split(key, 7)
    scale = 1.0 / jnp.sqrt(H)  # PyTorch default uniform(-1/sqrt(H), 1/sqrt(H))
    W_ih = jax.random.uniform(ks[0], (4 * H, F), jnp.float32, -scale, scale)
    W_hh = jax.random.uniform(ks[1], (4 * H, H), jnp.float32, -scale, scale)
    b_ih = jax.random.uniform(ks[2], (4 * H,), jnp.float32, -scale, scale)
    b_hh = jax.random.uniform(ks[3], (4 * H,), jnp.float32, -scale, scale)
    fc_scale = 1.0 / jnp.sqrt(H * T)
    W_fc = jax.random.uniform(ks[4], (N_OUT, H * T), jnp.float32, -fc_scale, fc_scale)
    b_fc = jax.random.uniform(ks[5], (N_OUT,), jnp.float32, -fc_scale, fc_scale)
    params = (W_ih, W_hh, b_ih, b_hh, W_fc, b_fc)

    x = jax.random.normal(ks[6], (B, T, F), jnp.float32)

    prepped = jax.tree.map(jax.block_until_ready, prepare_params(params))  # one-time prep
    out = jax.block_until_ready(lstm_forecaster_forward(x, prepped))
    ref = jax.block_until_ready(ref_forward(x, params))

    assert out.shape == (B, N_OUT)
    # bf16 MXU operands (f32 accumulation) across the T-step recurrence -> relaxed tolerance.
    assert jnp.allclose(out, ref, rtol=2e-2, atol=2e-2), (out, ref)
    print("KERNEL_OK")
</pallas_src>

<mosaic_0001>
module attributes {stable_mosaic.version = 11 : i64} {
  func.func @lstm_fc_kernel(%arg0: memref<64x4xbf16, #tpu.memory_space<vmem>>, %arg1: memref<4x128xbf16, #tpu.memory_space<vmem>>, %arg2: memref<32x128xbf16, #tpu.memory_space<vmem>>, %arg3: memref<1x128xf32, #tpu.memory_space<vmem>>, %arg4: memref<256x8xbf16, #tpu.memory_space<vmem>>, %arg5: memref<1x8xf32, #tpu.memory_space<vmem>>, %arg6: memref<8x8xf32, #tpu.memory_space<vmem>>, %arg7: memref<8x256xf32, #tpu.memory_space<vmem>>) attributes {dimension_semantics = [], scalar_prefetch = 0 : i64, scratch_operands = 1 : i64, tpu.core_type = #tpu.core_type<tc>} {
    %c0 = arith.constant 0 : index
    %c0_0 = arith.constant 0 : index
    %0 = vector.load %arg2[%c0, %c0_0] : memref<32x128xbf16, #tpu.memory_space<vmem>>, vector<32x128xbf16>
    %c0_1 = arith.constant 0 : index
    %c0_2 = arith.constant 0 : index
    %1 = vector.load %arg0[%c0_1, %c0_2] : memref<64x4xbf16, #tpu.memory_space<vmem>>, vector<64x4xbf16>
    %c0_3 = arith.constant 0 : index
    %c0_4 = arith.constant 0 : index
    %2 = vector.load %arg1[%c0_3, %c0_4] : memref<4x128xbf16, #tpu.memory_space<vmem>>, vector<4x128xbf16>
    %cst = arith.constant dense<0.000000e+00> : vector<64x128xf32>
    %3 = tpu.matmul %1, %2, %cst {dimension_numbers = #tpu.dot_dimension_numbers<[1], [0], [0], [1], [0, 0, 1, 1], [], []>} : vector<64x4xbf16>, vector<4x128xbf16>, vector<64x128xf32> -> vector<64x128xf32>
    %c0_5 = arith.constant 0 : index
    %c0_6 = arith.constant 0 : index
    %4 = vector.load %arg3[%c0_5, %c0_6] : memref<1x128xf32, #tpu.memory_space<vmem>>, vector<1x128xf32>
    %5 = vector.broadcast %4 : vector<1x128xf32> to vector<64x128xf32>
    %6 = arith.addf %3, %5 : vector<64x128xf32>
    %cst_7 = arith.constant 0.000000e+00 : f32
    %7 = vector.broadcast %cst_7 : f32 to vector<8x32xf32>
    %cst_8 = arith.constant 0.000000e+00 : f32
    %8 = vector.broadcast %cst_8 : f32 to vector<8x32xf32>
    %9 = vector.extract_strided_slice %6 {offsets = [0, 0], sizes = [8, 128], strides = [1, 1]} : vector<64x128xf32> to vector<8x128xf32>
    %10 = arith.truncf %7 : vector<8x32xf32> to vector<8x32xbf16>
    %cst_9 = arith.constant dense<0.000000e+00> : vector<8x128xf32>
    %11 = tpu.matmul %10, %0, %cst_9 {dimension_numbers = #tpu.dot_dimension_numbers<[1], [0], [0], [1], [0, 0, 1, 1], [], []>} : vector<8x32xbf16>, vector<32x128xbf16>, vector<8x128xf32> -> vector<8x128xf32>
    %12 = arith.addf %9, %11 : vector<8x128xf32>
    %13 = math.tanh %12 : vector<8x128xf32>
    %14 = vector.extract_strided_slice %13 {offsets = [0, 0], sizes = [8, 32], strides = [1, 1]} : vector<8x128xf32> to vector<8x32xf32>
    %cst_10 = arith.constant 5.000000e-01 : f32
    %15 = vector.broadcast %cst_10 : f32 to vector<8x32xf32>
    %16 = arith.mulf %15, %14 : vector<8x32xf32>
    %cst_11 = arith.constant 5.000000e-01 : f32
    %17 = vector.broadcast %cst_11 : f32 to vector<8x32xf32>
    %18 = arith.addf %16, %17 : vector<8x32xf32>
    %19 = vector.extract_strided_slice %13 {offsets = [0, 32], sizes = [8, 32], strides = [1, 1]} : vector<8x128xf32> to vector<8x32xf32>
    %cst_12 = arith.constant 5.000000e-01 : f32
    %20 = vector.broadcast %cst_12 : f32 to vector<8x32xf32>
    %21 = arith.mulf %20, %19 : vector<8x32xf32>
    %cst_13 = arith.constant 5.000000e-01 : f32
    %22 = vector.broadcast %cst_13 : f32 to vector<8x32xf32>
    %23 = arith.addf %21, %22 : vector<8x32xf32>
    %24 = vector.extract_strided_slice %13 {offsets = [0, 64], sizes = [8, 32], strides = [1, 1]} : vector<8x128xf32> to vector<8x32xf32>
    %25 = vector.extract_strided_slice %13 {offsets = [0, 96], sizes = [8, 32], strides = [1, 1]} : vector<8x128xf32> to vector<8x32xf32>
    %cst_14 = arith.constant 5.000000e-01 : f32
    %26 = vector.broadcast %cst_14 : f32 to vector<8x32xf32>
    %27 = arith.mulf %26, %25 : vector<8x32xf32>
    %cst_15 = arith.constant 5.000000e-01 : f32
    %28 = vector.broadcast %cst_15 : f32 to vector<8x32xf32>
    %29 = arith.addf %27, %28 : vector<8x32xf32>
    %30 = arith.mulf %23, %8 : vector<8x32xf32>
    %31 = arith.mulf %18, %24 : vector<8x32xf32>
    %32 = arith.addf %30, %31 : vector<8x32xf32>
    %33 = math.tanh %32 : vector<8x32xf32>
    %34 = arith.mulf %29, %33 : vector<8x32xf32>
    %c0_16 = arith.constant 0 : index
    %c0_17 = arith.constant 0 : index
    %35 = vector.load %arg7[%c0_16, %c0_17] : memref<8x256xf32, #tpu.memory_space<vmem>>, vector<8x32xf32>
    tpu.vector_store %arg7[%c0_16, %c0_17], %34 {strides = array<i32>} : memref<8x256xf32, #tpu.memory_space<vmem>>, vector<8x32xf32>,
    %36 = vector.extract_strided_slice %6 {offsets = [8, 0], sizes = [8, 128], strides = [1, 1]} : vector<64x128xf32> to vector<8x128xf32>
    %37 = arith.truncf %34 : vector<8x32xf32> to vector<8x32xbf16>
    %cst_18 = arith.constant dense<0.000000e+00> : vector<8x128xf32>
    %38 = tpu.matmul %37, %0, %cst_18 {dimension_numbers = #tpu.dot_dimension_numbers<[1], [0], [0], [1], [0, 0, 1, 1], [], []>} : vector<8x32xbf16>, vector<32x128xbf16>, vector<8x128xf32> -> vector<8x128xf32>
    %39 = arith.addf %36, %38 : vector<8x128xf32>
    %40 = math.tanh %39 : vector<8x128xf32>
    %41 = vector.extract_strided_slice %40 {offsets = [0, 0], sizes = [8, 32], strides = [1, 1]} : vector<8x128xf32> to vector<8x32xf32>
    %cst_19 = arith.constant 5.000000e-01 : f32
    %42 = vector.broadcast %cst_19 : f32 to vector<8x32xf32>
    %43 = arith.mulf %42, %41 : vector<8x32xf32>
    %cst_20 = arith.constant 5.000000e-01 : f32
    %44 = vector.broadcast %cst_20 : f32 to vector<8x32xf32>
    %45 = arith.addf %43, %44 : vector<8x32xf32>
    %46 = vector.extract_strided_slice %40 {offsets = [0, 32], sizes = [8, 32], strides = [1, 1]} : vector<8x128xf32> to vector<8x32xf32>
    %cst_21 = arith.constant 5.000000e-01 : f32
    %47 = vector.broadcast %cst_21 : f32 to vector<8x32xf32>
    %48 = arith.mulf %47, %46 : vector<8x32xf32>
    %cst_22 = arith.constant 5.000000e-01 : f32
    %49 = vector.broadcast %cst_22 : f32 to vector<8x32xf32>
    %50 = arith.addf %48, %49 : vector<8x32xf32>
    %51 = vector.extract_strided_slice %40 {offsets = [0, 64], sizes = [8, 32], strides = [1, 1]} : vector<8x128xf32> to vector<8x32xf32>
    %52 = vector.extract_strided_slice %40 {offsets = [0, 96], sizes = [8, 32], strides = [1, 1]} : vector<8x128xf32> to vector<8x32xf32>
    %cst_23 = arith.constant 5.000000e-01 : f32
    %53 = vector.broadcast %cst_23 : f32 to vector<8x32xf32>
    %54 = arith.mulf %53, %52 : vector<8x32xf32>
    %cst_24 = arith.constant 5.000000e-01 : f32
    %55 = vector.broadcast %cst_24 : f32 to vector<8x32xf32>
    %56 = arith.addf %54, %55 : vector<8x32xf32>
    %57 = arith.mulf %50, %32 : vector<8x32xf32>
    %58 = arith.mulf %45, %51 : vector<8x32xf32>
    %59 = arith.addf %57, %58 : vector<8x32xf32>
    %60 = math.tanh %59 : vector<8x32xf32>
    %61 = arith.mulf %56, %60 : vector<8x32xf32>
    %c0_25 = arith.constant 0 : index
    %c32 = arith.constant 32 : index
    %62 = vector.load %arg7[%c0_25, %c32] : memref<8x256xf32, #tpu.memory_space<vmem>>, vector<8x32xf32>
    tpu.vector_store %arg7[%c0_25, %c32], %61 {strides = array<i32>} : memref<8x256xf32, #tpu.memory_space<vmem>>, vector<8x32xf32>,
    %63 = vector.extract_strided_slice %6 {offsets = [16, 0], sizes = [8, 128], strides = [1, 1]} : vector<64x128xf32> to vector<8x128xf32>
    %64 = arith.truncf %61 : vector<8x32xf32> to vector<8x32xbf16>
    %cst_26 = arith.constant dense<0.000000e+00> : vector<8x128xf32>
    %65 = tpu.matmul %64, %0, %cst_26 {dimension_numbers = #tpu.dot_dimension_numbers<[1], [0], [0], [1], [0, 0, 1, 1], [], []>} : vector<8x32xbf16>, vector<32x128xbf16>, vector<8x128xf32> -> vector<8x128xf32>
    %66 = arith.addf %63, %65 : vector<8x128xf32>
    %67 = math.tanh %66 : vector<8x128xf32>
    %68 = vector.extract_strided_slice %67 {offsets = [0, 0], sizes = [8, 32], strides = [1, 1]} : vector<8x128xf32> to vector<8x32xf32>
    %cst_27 = arith.constant 5.000000e-01 : f32
    %69 = vector.broadcast %cst_27 : f32 to vector<8x32xf32>
    %70 = arith.mulf %69, %68 : vector<8x32xf32>
    %cst_28 = arith.constant 5.000000e-01 : f32
    %71 = vector.broadcast %cst_28 : f32 to vector<8x32xf32>
    %72 = arith.addf %70, %71 : vector<8x32xf32>
    %73 = vector.extract_strided_slice %67 {offsets = [0, 32], sizes = [8, 32], strides = [1, 1]} : vector<8x128xf32> to vector<8x32xf32>
    %cst_29 = arith.constant 5.000000e-01 : f32
    %74 = vector.broadcast %cst_29 : f32 to vector<8x32xf32>
    %75 = arith.mulf %74, %73 : vector<8x32xf32>
    %cst_30 = arith.constant 5.000000e-01 : f32
    %76 = vector.broadcast %cst_30 : f32 to vector<8x32xf32>
    %77 = arith.addf %75, %76 : vector<8x32xf32>
    %78 = vector.extract_strided_slice %67 {offsets = [0, 64], sizes = [8, 32], strides = [1, 1]} : vector<8x128xf32> to vector<8x32xf32>
    %79 = vector.extract_strided_slice %67 {offsets = [0, 96], sizes = [8, 32], strides = [1, 1]} : vector<8x128xf32> to vector<8x32xf32>
    %cst_31 = arith.constant 5.000000e-01 : f32
    %80 = vector.broadcast %cst_31 : f32 to vector<8x32xf32>
    %81 = arith.mulf %80, %79 : vector<8x32xf32>
    %cst_32 = arith.constant 5.000000e-01 : f32
    %82 = vector.broadcast %cst_32 : f32 to vector<8x32xf32>
    %83 = arith.addf %81, %82 : vector<8x32xf32>
    %84 = arith.mulf %77, %59 : vector<8x32xf32>
    %85 = arith.mulf %72, %78 : vector<8x32xf32>
    %86 = arith.addf %84, %85 : vector<8x32xf32>
    %87 = math.tanh %86 : vector<8x32xf32>
    %88 = arith.mulf %83, %87 : vector<8x32xf32>
    %c0_33 = arith.constant 0 : index
    %c64 = arith.constant 64 : index
    %89 = vector.load %arg7[%c0_33, %c64] : memref<8x256xf32, #tpu.memory_space<vmem>>, vector<8x32xf32>
    tpu.vector_store %arg7[%c0_33, %c64], %88 {strides = array<i32>} : memref<8x256xf32, #tpu.memory_space<vmem>>, vector<8x32xf32>,
    %90 = vector.extract_strided_slice %6 {offsets = [24, 0], sizes = [8, 128], strides = [1, 1]} : vector<64x128xf32> to vector<8x128xf32>
    %91 = arith.truncf %88 : vector<8x32xf32> to vector<8x32xbf16>
    %cst_34 = arith.constant dense<0.000000e+00> : vector<8x128xf32>
    %92 = tpu.matmul %91, %0, %cst_34 {dimension_numbers = #tpu.dot_dimension_numbers<[1], [0], [0], [1], [0, 0, 1, 1], [], []>} : vector<8x32xbf16>, vector<32x128xbf16>, vector<8x128xf32> -> vector<8x128xf32>
    %93 = arith.addf %90, %92 : vector<8x128xf32>
    %94 = math.tanh %93 : vector<8x128xf32>
    %95 = vector.extract_strided_slice %94 {offsets = [0, 0], sizes = [8, 32], strides = [1, 1]} : vector<8x128xf32> to vector<8x32xf32>
    %cst_35 = arith.constant 5.000000e-01 : f32
    %96 = vector.broadcast %cst_35 : f32 to vector<8x32xf32>
    %97 = arith.mulf %96, %95 : vector<8x32xf32>
    %cst_36 = arith.constant 5.000000e-01 : f32
    %98 = vector.broadcast %cst_36 : f32 to vector<8x32xf32>
    %99 = arith.addf %97, %98 : vector<8x32xf32>
    %100 = vector.extract_strided_slice %94 {offsets = [0, 32], sizes = [8, 32], strides = [1, 1]} : vector<8x128xf32> to vector<8x32xf32>
    %cst_37 = arith.constant 5.000000e-01 : f32
    %101 = vector.broadcast %cst_37 : f32 to vector<8x32xf32>
    %102 = arith.mulf %101, %100 : vector<8x32xf32>
    %cst_38 = arith.constant 5.000000e-01 : f32
    %103 = vector.broadcast %cst_38 : f32 to vector<8x32xf32>
    %104 = arith.addf %102, %103 : vector<8x32xf32>
    %105 = vector.extract_strided_slice %94 {offsets = [0, 64], sizes = [8, 32], strides = [1, 1]} : vector<8x128xf32> to vector<8x32xf32>
    %106 = vector.extract_strided_slice %94 {offsets = [0, 96], sizes = [8, 32], strides = [1, 1]} : vector<8x128xf32> to vector<8x32xf32>
    %cst_39 = arith.constant 5.000000e-01 : f32
    %107 = vector.broadcast %cst_39 : f32 to vector<8x32xf32>
    %108 = arith.mulf %107, %106 : vector<8x32xf32>
    %cst_40 = arith.constant 5.000000e-01 : f32
    %109 = vector.broadcast %cst_40 : f32 to vector<8x32xf32>
    %110 = arith.addf %108, %109 : vector<8x32xf32>
    %111 = arith.mulf %104, %86 : vector<8x32xf32>
    %112 = arith.mulf %99, %105 : vector<8x32xf32>
    %113 = arith.addf %111, %112 : vector<8x32xf32>
    %114 = math.tanh %113 : vector<8x32xf32>
    %115 = arith.mulf %110, %114 : vector<8x32xf32>
    %c0_41 = arith.constant 0 : index
    %c96 = arith.constant 96 : index
    %116 = vector.load %arg7[%c0_41, %c96] : memref<8x256xf32, #tpu.memory_space<vmem>>, vector<8x32xf32>
    tpu.vector_store %arg7[%c0_41, %c96], %115 {strides = array<i32>} : memref<8x256xf32, #tpu.memory_space<vmem>>, vector<8x32xf32>,
    %117 = vector.extract_strided_slice %6 {offsets = [32, 0], sizes = [8, 128], strides = [1, 1]} : vector<64x128xf32> to vector<8x128xf32>
    %118 = arith.truncf %115 : vector<8x32xf32> to vector<8x32xbf16>
    %cst_42 = arith.constant dense<0.000000e+00> : vector<8x128xf32>
    %119 = tpu.matmul %118, %0, %cst_42 {dimension_numbers = #tpu.dot_dimension_numbers<[1], [0], [0], [1], [0, 0, 1, 1], [], []>} : vector<8x32xbf16>, vector<32x128xbf16>, vector<8x128xf32> -> vector<8x128xf32>
    %120 = arith.addf %117, %119 : vector<8x128xf32>
    %121 = math.tanh %120 : vector<8x128xf32>
    %122 = vector.extract_strided_slice %121 {offsets = [0, 0], sizes = [8, 32], strides = [1, 1]} : vector<8x128xf32> to vector<8x32xf32>
    %cst_43 = arith.constant 5.000000e-01 : f32
    %123 = vector.broadcast %cst_43 : f32 to vector<8x32xf32>
    %124 = arith.mulf %123, %122 : vector<8x32xf32>
    %cst_44 = arith.constant 5.000000e-01 : f32
    %125 = vector.broadcast %cst_44 : f32 to vector<8x32xf32>
    %126 = arith.addf %124, %125 : vector<8x32xf32>
    %127 = vector.extract_strided_slice %121 {offsets = [0, 32], sizes = [8, 32], strides = [1, 1]} : vector<8x128xf32> to vector<8x32xf32>
    %cst_45 = arith.constant 5.000000e-01 : f32
    %128 = vector.broadcast %cst_45 : f32 to vector<8x32xf32>
    %129 = arith.mulf %128, %127 : vector<8x32xf32>
    %cst_46 = arith.constant 5.000000e-01 : f32
    %130 = vector.broadcast %cst_46 : f32 to vector<8x32xf32>
    %131 = arith.addf %129, %130 : vector<8x32xf32>
    %132 = vector.extract_strided_slice %121 {offsets = [0, 64], sizes = [8, 32], strides = [1, 1]} : vector<8x128xf32> to vector<8x32xf32>
    %133 = vector.extract_strided_slice %121 {offsets = [0, 96], sizes = [8, 32], strides = [1, 1]} : vector<8x128xf32> to vector<8x32xf32>
    %cst_47 = arith.constant 5.000000e-01 : f32
    %134 = vector.broadcast %cst_47 : f32 to vector<8x32xf32>
    %135 = arith.mulf %134, %133 : vector<8x32xf32>
    %cst_48 = arith.constant 5.000000e-01 : f32
    %136 = vector.broadcast %cst_48 : f32 to vector<8x32xf32>
    %137 = arith.addf %135, %136 : vector<8x32xf32>
    %138 = arith.mulf %131, %113 : vector<8x32xf32>
    %139 = arith.mulf %126, %132 : vector<8x32xf32>
    %140 = arith.addf %138, %139 : vector<8x32xf32>
    %141 = math.tanh %140 : vector<8x32xf32>
    %142 = arith.mulf %137, %141 : vector<8x32xf32>
    %c0_49 = arith.constant 0 : index
    %c128 = arith.constant 128 : index
    %143 = vector.load %arg7[%c0_49, %c128] : memref<8x256xf32, #tpu.memory_space<vmem>>, vector<8x32xf32>
    tpu.vector_store %arg7[%c0_49, %c128], %142 {strides = array<i32>} : memref<8x256xf32, #tpu.memory_space<vmem>>, vector<8x32xf32>,
    %144 = vector.extract_strided_slice %6 {offsets = [40, 0], sizes = [8, 128], strides = [1, 1]} : vector<64x128xf32> to vector<8x128xf32>
    %145 = arith.truncf %142 : vector<8x32xf32> to vector<8x32xbf16>
    %cst_50 = arith.constant dense<0.000000e+00> : vector<8x128xf32>
    %146 = tpu.matmul %145, %0, %cst_50 {dimension_numbers = #tpu.dot_dimension_numbers<[1], [0], [0], [1], [0, 0, 1, 1], [], []>} : vector<8x32xbf16>, vector<32x128xbf16>, vector<8x128xf32> -> vector<8x128xf32>
    %147 = arith.addf %144, %146 : vector<8x128xf32>
    %148 = math.tanh %147 : vector<8x128xf32>
    %149 = vector.extract_strided_slice %148 {offsets = [0, 0], sizes = [8, 32], strides = [1, 1]} : vector<8x128xf32> to vector<8x32xf32>
    %cst_51 = arith.constant 5.000000e-01 : f32
    %150 = vector.broadcast %cst_51 : f32 to vector<8x32xf32>
    %151 = arith.mulf %150, %149 : vector<8x32xf32>
    %cst_52 = arith.constant 5.000000e-01 : f32
    %152 = vector.broadcast %cst_52 : f32 to vector<8x32xf32>
    %153 = arith.addf %151, %152 : vector<8x32xf32>
    %154 = vector.extract_strided_slice %148 {offsets = [0, 32], sizes = [8, 32], strides = [1, 1]} : vector<8x128xf32> to vector<8x32xf32>
    %cst_53 = arith.constant 5.000000e-01 : f32
    %155 = vector.broadcast %cst_53 : f32 to vector<8x32xf32>
    %156 = arith.mulf %155, %154 : vector<8x32xf32>
    %cst_54 = arith.constant 5.000000e-01 : f32
    %157 = vector.broadcast %cst_54 : f32 to vector<8x32xf32>
    %158 = arith.addf %156, %157 : vector<8x32xf32>
    %159 = vector.extract_strided_slice %148 {offsets = [0, 64], sizes = [8, 32], strides = [1, 1]} : vector<8x128xf32> to vector<8x32xf32>
    %160 = vector.extract_strided_slice %148 {offsets = [0, 96], sizes = [8, 32], strides = [1, 1]} : vector<8x128xf32> to vector<8x32xf32>
    %cst_55 = arith.constant 5.000000e-01 : f32
    %161 = vector.broadcast %cst_55 : f32 to vector<8x32xf32>
    %162 = arith.mulf %161, %160 : vector<8x32xf32>
    %cst_56 = arith.constant 5.000000e-01 : f32
    %163 = vector.broadcast %cst_56 : f32 to vector<8x32xf32>
    %164 = arith.addf %162, %163 : vector<8x32xf32>
    %165 = arith.mulf %158, %140 : vector<8x32xf32>
    %166 = arith.mulf %153, %159 : vector<8x32xf32>
    %167 = arith.addf %165, %166 : vector<8x32xf32>
    %168 = math.tanh %167 : vector<8x32xf32>
    %169 = arith.mulf %164, %168 : vector<8x32xf32>
    %c0_57 = arith.constant 0 : index
    %c160 = arith.constant 160 : index
    %170 = vector.load %arg7[%c0_57, %c160] : memref<8x256xf32, #tpu.memory_space<vmem>>, vector<8x32xf32>
    tpu.vector_store %arg7[%c0_57, %c160], %169 {strides = array<i32>} : memref<8x256xf32, #tpu.memory_space<vmem>>, vector<8x32xf32>,
    %171 = vector.extract_strided_slice %6 {offsets = [48, 0], sizes = [8, 128], strides = [1, 1]} : vector<64x128xf32> to vector<8x128xf32>
    %172 = arith.truncf %169 : vector<8x32xf32> to vector<8x32xbf16>
    %cst_58 = arith.constant dense<0.000000e+00> : vector<8x128xf32>
    %173 = tpu.matmul %172, %0, %cst_58 {dimension_numbers = #tpu.dot_dimension_numbers<[1], [0], [0], [1], [0, 0, 1, 1], [], []>} : vector<8x32xbf16>, vector<32x128xbf16>, vector<8x128xf32> -> vector<8x128xf32>
    %174 = arith.addf %171, %173 : vector<8x128xf32>
    %175 = math.tanh %174 : vector<8x128xf32>
    %176 = vector.extract_strided_slice %175 {offsets = [0, 0], sizes = [8, 32], strides = [1, 1]} : vector<8x128xf32> to vector<8x32xf32>
    %cst_59 = arith.constant 5.000000e-01 : f32
    %177 = vector.broadcast %cst_59 : f32 to vector<8x32xf32>
    %178 = arith.mulf %177, %176 : vector<8x32xf32>
    %cst_60 = arith.constant 5.000000e-01 : f32
    %179 = vector.broadcast %cst_60 : f32 to vector<8x32xf32>
    %180 = arith.addf %178, %179 : vector<8x32xf32>
    %181 = vector.extract_strided_slice %175 {offsets = [0, 32], sizes = [8, 32], strides = [1, 1]} : vector<8x128xf32> to vector<8x32xf32>
    %cst_61 = arith.constant 5.000000e-01 : f32
    %182 = vector.broadcast %cst_61 : f32 to vector<8x32xf32>
    %183 = arith.mulf %182, %181 : vector<8x32xf32>
    %cst_62 = arith.constant 5.000000e-01 : f32
    %184 = vector.broadcast %cst_62 : f32 to vector<8x32xf32>
    %185 = arith.addf %183, %184 : vector<8x32xf32>
    %186 = vector.extract_strided_slice %175 {offsets = [0, 64], sizes = [8, 32], strides = [1, 1]} : vector<8x128xf32> to vector<8x32xf32>
    %187 = vector.extract_strided_slice %175 {offsets = [0, 96], sizes = [8, 32], strides = [1, 1]} : vector<8x128xf32> to vector<8x32xf32>
    %cst_63 = arith.constant 5.000000e-01 : f32
    %188 = vector.broadcast %cst_63 : f32 to vector<8x32xf32>
    %189 = arith.mulf %188, %187 : vector<8x32xf32>
    %cst_64 = arith.constant 5.000000e-01 : f32
    %190 = vector.broadcast %cst_64 : f32 to vector<8x32xf32>
    %191 = arith.addf %189, %190 : vector<8x32xf32>
    %192 = arith.mulf %185, %167 : vector<8x32xf32>
    %193 = arith.mulf %180, %186 : vector<8x32xf32>
    %194 = arith.addf %192, %193 : vector<8x32xf32>
    %195 = math.tanh %194 : vector<8x32xf32>
    %196 = arith.mulf %191, %195 : vector<8x32xf32>
    %c0_65 = arith.constant 0 : index
    %c192 = arith.constant 192 : index
    %197 = vector.load %arg7[%c0_65, %c192] : memref<8x256xf32, #tpu.memory_space<vmem>>, vector<8x32xf32>
    tpu.vector_store %arg7[%c0_65, %c192], %196 {strides = array<i32>} : memref<8x256xf32, #tpu.memory_space<vmem>>, vector<8x32xf32>,
    %198 = vector.extract_strided_slice %6 {offsets = [56, 0], sizes = [8, 128], strides = [1, 1]} : vector<64x128xf32> to vector<8x128xf32>
    %199 = arith.truncf %196 : vector<8x32xf32> to vector<8x32xbf16>
    %cst_66 = arith.constant dense<0.000000e+00> : vector<8x128xf32>
    %200 = tpu.matmul %199, %0, %cst_66 {dimension_numbers = #tpu.dot_dimension_numbers<[1], [0], [0], [1], [0, 0, 1, 1], [], []>} : vector<8x32xbf16>, vector<32x128xbf16>, vector<8x128xf32> -> vector<8x128xf32>
    %201 = arith.addf %198, %200 : vector<8x128xf32>
    %202 = math.tanh %201 : vector<8x128xf32>
    %203 = vector.extract_strided_slice %202 {offsets = [0, 0], sizes = [8, 32], strides = [1, 1]} : vector<8x128xf32> to vector<8x32xf32>
    %cst_67 = arith.constant 5.000000e-01 : f32
    %204 = vector.broadcast %cst_67 : f32 to vector<8x32xf32>
    %205 = arith.mulf %204, %203 : vector<8x32xf32>
    %cst_68 = arith.constant 5.000000e-01 : f32
    %206 = vector.broadcast %cst_68 : f32 to vector<8x32xf32>
    %207 = arith.addf %205, %206 : vector<8x32xf32>
    %208 = vector.extract_strided_slice %202 {offsets = [0, 32], sizes = [8, 32], strides = [1, 1]} : vector<8x128xf32> to vector<8x32xf32>
    %cst_69 = arith.constant 5.000000e-01 : f32
    %209 = vector.broadcast %cst_69 : f32 to vector<8x32xf32>
    %210 = arith.mulf %209, %208 : vector<8x32xf32>
    %cst_70 = arith.constant 5.000000e-01 : f32
    %211 = vector.broadcast %cst_70 : f32 to vector<8x32xf32>
    %212 = arith.addf %210, %211 : vector<8x32xf32>
    %213 = vector.extract_strided_slice %202 {offsets = [0, 64], sizes = [8, 32], strides = [1, 1]} : vector<8x128xf32> to vector<8x32xf32>
    %214 = vector.extract_strided_slice %202 {offsets = [0, 96], sizes = [8, 32], strides = [1, 1]} : vector<8x128xf32> to vector<8x32xf32>
    %cst_71 = arith.constant 5.000000e-01 : f32
    %215 = vector.broadcast %cst_71 : f32 to vector<8x32xf32>
    %216 = arith.mulf %215, %214 : vector<8x32xf32>
    %cst_72 = arith.constant 5.000000e-01 : f32
    %217 = vector.broadcast %cst_72 : f32 to vector<8x32xf32>
    %218 = arith.addf %216, %217 : vector<8x32xf32>
    %219 = arith.mulf %212, %194 : vector<8x32xf32>
    %220 = arith.mulf %207, %213 : vector<8x32xf32>
    %221 = arith.addf %219, %220 : vector<8x32xf32>
    %222 = math.tanh %221 : vector<8x32xf32>
    %223 = arith.mulf %218, %222 : vector<8x32xf32>
    %c0_73 = arith.constant 0 : index
    %c224 = arith.constant 224 : index
    %224 = vector.load %arg7[%c0_73, %c224] : memref<8x256xf32, #tpu.memory_space<vmem>>, vector<8x32xf32>
    tpu.vector_store %arg7[%c0_73, %c224], %223 {strides = array<i32>} : memref<8x256xf32, #tpu.memory_space<vmem>>, vector<8x32xf32>,
    %c0_74 = arith.constant 0 : index
    %c0_75 = arith.constant 0 : index
    %225 = vector.load %arg7[%c0_74, %c0_75] : memref<8x256xf32, #tpu.memory_space<vmem>>, vector<8x256xf32>
    %226 = arith.truncf %225 : vector<8x256xf32> to vector<8x256xbf16>
    %c0_76 = arith.constant 0 : index
    %c0_77 = arith.constant 0 : index
    %227 = vector.load %arg4[%c0_76, %c0_77] : memref<256x8xbf16, #tpu.memory_space<vmem>>, vector<256x8xbf16>
    %cst_78 = arith.constant dense<0.000000e+00> : vector<8x8xf32>
    %228 = tpu.matmul %226, %227, %cst_78 {dimension_numbers = #tpu.dot_dimension_numbers<[1], [0], [0], [1], [0, 0, 1, 1], [], []>} : vector<8x256xbf16>, vector<256x8xbf16>, vector<8x8xf32> -> vector<8x8xf32>
    %c0_79 = arith.constant 0 : index
    %c0_80 = arith.constant 0 : index
    %229 = vector.load %arg5[%c0_79, %c0_80] : memref<1x8xf32, #tpu.memory_space<vmem>>, vector<1x8xf32>
    %230 = vector.broadcast %229 : vector<1x8xf32> to vector<8x8xf32>
    %231 = arith.addf %228, %230 : vector<8x8xf32>
    %c0_81 = arith.constant 0 : index
    %c0_82 = arith.constant 0 : index
    %232 = vector.load %arg6[%c0_81, %c0_82] : memref<8x8xf32, #tpu.memory_space<vmem>>, vector<8x8xf32>
    tpu.vector_store %arg6[%c0_81, %c0_82], %231 {strides = array<i32>} : memref<8x8xf32, #tpu.memory_space<vmem>>, vector<8x8xf32>,
    return
  }
}

</mosaic_0001>

<bundles_post_ra>
// kernel: tpu_custom_call.1
= control target key start
LH: loop header
LB: loop body
LE: loop exit
PB: predicated region body
PF: predicated region fallthrough
CT: control target
= control target key end

     0   :  { %vm78_vm0 = vcmask 1041408   ;;  %vm65_vm1 = vcmask 31744   ;;  %v1176_v4 = vmov 0.0   ;;  %vm1177_vm2 = vmmov 0   ;;  %s1461_s0 = inlined_call_operand.vmem [shape: bf16[64,4], index: 0, kind: input, shape index: {}]   ;;  %s1462_s1 = inlined_call_operand.vmem [shape: bf16[4,128], index: 1, kind: input, shape index: {}]   ;;  %s1463_s2 = inlined_call_operand.vmem [shape: bf16[32,128], index: 2, kind: input, shape index: {}]   ;;  %s1464_s3 = inlined_call_operand.vmem [shape: f32[1,128], index: 3, kind: input, shape index: {}]   ;;  %s1465_s4 = inlined_call_operand.vmem [shape: bf16[256,8], index: 4, kind: input, shape index: {}]   ;;  %s1466_s5 = inlined_call_operand.vmem [shape: f32[1,8], index: 5, kind: input, shape index: {}]   ;;  %s1467_s6 = inlined_call_operand.hbm [shape: f32[8,8], index: 6, kind: output, shape index: {}]  }
   0x1   :  { %v37_v0 = vld [vmem:[%s1462_s1] sm:$0x3]  ;;  %v1099_v3 = vld [vmem:[%s1461_s0 + $0x8] sm:$0xff]   ;;  %1042 = vmatprep.subr.bf16.mxu0 %v1176_v4  ;;  %v1101_v6 = vld [vmem:[%s1461_s0 + $0x10] sm:$0xff]   ;;  %1046 = vmatprep.mubr.msk.bf16.mxu0 %vm1177_vm2, %v1176_v4 }
   0x2   :  { %v1098_v1 = vld [vmem:[%s1461_s0] sm:$0xff]   ;;  %1090 = vmatprep.subr.msk.bf16.mxu1 %vm78_vm0, %v37_v0  ;;  %v80_v2 = vsel %vm78_vm0, %v37_v0, 0  ;;  %v1247_v7 = vld [vmem:[%s1463_s2 + $0x8] sm:$0xff]   ;;  %v1102_v8 = vld [vmem:[%s1461_s0 + $0x18] sm:$0xff]  }
   0x3   :  { %1017 = vmatpush3.bf16.msra.mxu1 %v80_v2  ;;  %1018 = vmatprep.mubr.msk.bf16.mxu1 %vm65_vm1, %v1098_v1  ;;  %v1232_v5 = vld [vmem:[%s1463_s2] sm:$0xff]  }
   0x4   :  { %1026 = vmatprep.subr.bf16.mxu1 %v1176_v4  ;;  %1043 = vmatpush3.bf16.msra.mxu0 %v1232_v5 }
   0x5   :  { %1044 = vmatprep.subr.bf16.mxu0 %v1176_v4 }
   0x6   :  { %1019 = vmatmul.mubr.msk.bf16.vlgmr.msra.gmra.mrb[0].mxu1 %vm65_vm1, %v1099_v3 }
   0x7   :  { %1027 = vmatpush3.bf16.msra.mxu1 %v1232_v5  ;;  %1022 = vmatprep.mubr.msk.bf16.mxu1 %vm65_vm1, %v1101_v6 }
   0x8   :  { %1028 = vmatprep.subr.bf16.mxu1 %v1176_v4  ;;  %1045 = vmatpush3.bf16.msra.mxu0 %v1247_v7 }
   0x9   :  { %1058 = vmatprep.subr.bf16.mxu0 %v1176_v4 }
   0xb   :  { %1029 = vmatpush3.bf16.msra.mxu1 %v1247_v7 }
   0xc   :  { %1034 = vmatprep.subr.bf16.mxu1 %v1176_v4 }
   0xe   :  { %1023 = vmatmul.mubr.msk.bf16.gmra.mrb[4].mxu1 %vm65_vm1, %v1102_v8 }
   0xf   :  { %1030 = vmatprep.mubr.msk.bf16.mxu1 %vm1177_vm2, %v1176_v4 }
  0x10   :  { %11 = vsyncpa [#allocation4], 0  ;;  %v1178_v9 = vmov 0   ;;  %v930_v10 = vld [vmem:[%s1464_s3] ss:$0 sm:$0xff]  ;;  %s1179_s3 = smov 64  }
  0x11   :  { %s1180_s10 = smov 32   ;;  %vm159_vm3 = vcmask 261120   ;;  %s1181_s11 = smov 96   ;;  %vm301_vm4 = vcmask 523520   ;;  %vm375_vm5 = vcmask 785920   ;;  %vm445_vm6 = vcmask 1048320  }
  0x12   :  { %vm914_vm7 = vcmask 64512  }
  0x16   :  { %1031 = vmatmul.mubr.bf16.vlgmr.msra.gmra.mrb[8].mxu1 %v1178_v9 }
  0x17   :  { %1035 = vmatpush3.bf16.msra.mxu1 %v1232_v5  ;;  %1038 = vmatprep.mubr.msk.bf16.mxu1 %vm1177_vm2, %v1176_v4 }
  0x18   :  { %1036 = vmatprep.subr.bf16.mxu1 %v1176_v4 }
  0x1b   :  { %1037 = vmatpush3.bf16.msra.mxu1 %v1247_v7 }
  0x1c   :  { %1050 = vmatprep.subr.bf16.mxu1 %v1176_v4 }
  0xd9   :  { %v1020_v11 = vpop.f32.mrb[0].mxu1 }
  0xda   :  { %v1270_v12 = vadd.f32 %v1020_v11, %v930_v10  ;;  %v116_v13 = vpop.f32.mrb[1].mxu1 }
  0xdb   :  { %v1021_v14 = vpop.f32.mrb[2].mxu1  ;;  %v117_v26 = vadd.f32 %v930_v10, %v116_v13 }
  0xdc   :  { %v1272_v15 = vadd.f32 %v1021_v14, %v930_v10  ;;  %v119_v16 = vpop.f32.mrb[3].mxu1 }
  0xdd   :  { %v120_v17 = vadd.f32 %v930_v10, %v119_v16 }
  0xe1   :  { %v1024_v18 = vpop.f32.mrb[4].mxu1 }
  0xe2   :  { %v1274_v19 = vadd.f32 %v1024_v18, %v930_v10  ;;  %v132_v20 = vpop.f32.mrb[5].mxu1 }
  0xe3   :  { %v1276_v21 = vadd.f32 %v930_v10, %v132_v20  ;;  %v1025_v22 = vpop.f32.mrb[6].mxu1 }
  0xe4   :  { %v1278_v23 = vadd.f32 %v1025_v22, %v930_v10  ;;  %v135_v24 = vpop.f32.mrb[7].mxu1 }
  0xe5   :  { %v1280_v25 = vadd.f32 %v930_v10, %v135_v24 }
  0xe9   :  { %v197_v27 = vpop.f32.mrb[8].mxu1 }
  0xea   :  { %v203_v28 = vadd.f32 %v197_v27, %v117_v26  ;;  %v1032_v29 = vpop.f32.mrb[9].mxu1 }
  0xeb   :  { %v200_v30 = vpop.f32.mrb[10].mxu1 }
  0xec   :  { %1120 = vtanh.f32 %v203_v28  ;;  %v1033_v31 = vpop.f32.mrb[11].mxu1 }
  0xf6   :  { %v1121_v32 = vpop.eup %1120 }
  0xf7   :  { %209 = vrot.lane.b32.xlu0 %v1121_v32, %s1179_s3  ;;  %v205_v33 = vmul.f32 0.5, %v1121_v32 }
  0xf9   :  { %v206_v34 = vadd.f32 0.5, %v205_v33 }
  0xfb   :  { %v207_v37 = vmul.f32 0.0, %v206_v34 }
 0x169   :  { %v210_v35 = vpop.permute.xlu0 %209 }
 0x16a   :  { %v212_v36 = vmul.f32 %v210_v35, %v206_v34 }
 0x16c   :  { %214 = vrot.lane.b32.xlu0 %v212_v36, %s1180_s10 }
 0x1de   :  { %v215_v38 = vpop.permute.xlu0 %214 }
 0x1df   :  { %v217_v39 = vadd.f32 %v215_v38, %v207_v37 }
 0x1e1   :  { %1122 = vtanh.f32 %v217_v39 }
 0x1eb   :  { %v1123_v40 = vpop.eup %1122 }
 0x1ec   :  { %220 = vrot.lane.b32.xlu1 %v1123_v40, %s1179_s3 }
 0x25e   :  { %v221_v41 = vpop.permute.xlu1 %220 }
 0x25f   :  { %v1285_v42 = vmul.f32 %v221_v41, %v206_v34 }
 0x261   :  { %v229_v43 = vpack.c.bf16 %v1285_v42, %v1285_v42 }
 0x263   :  { %231 = vrot.lane.b32.xlu1 %v229_v43, %s1180_s10 }
 0x2d5   :  { %v232_v44 = vpop.permute.xlu1 %231 }
 0x2d6   :  { %1039 = vmatmul.mubr.msk.bf16.vlgmr.msra.gmra.mrb[12].mxu1 %vm159_vm3, %v232_v44 }
 0x2d7   :  { %1051 = vmatpush3.bf16.msra.mxu1 %v1232_v5  ;;  %1054 = vmatprep.mubr.msk.bf16.mxu1 %vm1177_vm2, %v1176_v4 }
 0x2d8   :  { %1052 = vmatprep.subr.bf16.mxu1 %v1176_v4 }
 0x2db   :  { %1053 = vmatpush3.bf16.msra.mxu1 %v1247_v7 }
 0x2dc   :  { %1066 = vmatprep.subr.bf16.mxu1 %v1176_v4 }
 0x3a9   :  { %v270_v45 = vpop.f32.mrb[12].mxu1 }
 0x3aa   :  { %v276_v46 = vadd.f32 %v270_v45, %v120_v17  ;;  %v1040_v47 = vpop.f32.mrb[13].mxu1 }
 0x3ab   :  { %v273_v48 = vpop.f32.mrb[14].mxu1 }
 0x3ac   :  { %1124 = vtanh.f32 %v276_v46  ;;  %v1041_v49 = vpop.f32.mrb[15].mxu1 }
 0x3b6   :  { %v1125_v50 = vpop.eup %1124 }
 0x3b7   :  { %282 = vrot.lane.b32.xlu0 %v1125_v50, %s1179_s3  ;;  %v278_v51 = vmul.f32 0.5, %v1125_v50 }
 0x3b9   :  { %v279_v52 = vadd.f32 0.5, %v278_v51 }
 0x3bb   :  { %v280_v55 = vmul.f32 %v279_v52, %v217_v39 }
 0x429   :  { %v283_v53 = vpop.permute.xlu0 %282 }
 0x42a   :  { %v285_v54 = vmul.f32 %v283_v53, %v279_v52 }
 0x42c   :  { %287 = vrot.lane.b32.xlu1 %v285_v54, %s1180_s10 }
 0x49e   :  { %v288_v56 = vpop.permute.xlu1 %287 }
 0x49f   :  { %v290_v57 = vadd.f32 %v288_v56, %v280_v55 }
 0x4a1   :  { %1126 = vtanh.f32 %v290_v57 }
 0x4ab   :  { %v1127_v58 = vpop.eup %1126 }
 0x4ac   :  { %293 = vrot.lane.b32.xlu0 %v1127_v58, %s1179_s3 }
 0x51e   :  { %v294_v59 = vpop.permute.xlu0 %293 }
 0x51f   :  { %v1300_v60 = vmul.f32 %v294_v59, %v279_v52 }
 0x521   :  { %v303_v61 = vpack.c.bf16 %v1300_v60, %v1300_v60 }
 0x523   :  { %305 = vrot.lane.b32.xlu1 %v303_v61, %s1180_s10 }
 0x595   :  { %v306_v62 = vpop.permute.xlu1 %305 }
 0x596   :  { %1047 = vmatmul.mubr.msk.bf16.vlgmr.msra.gmra.mrb[0].mxu0 %vm159_vm3, %v306_v62 }
 0x597   :  { %1059 = vmatpush3.bf16.msra.mxu0 %v1232_v5  ;;  %1062 = vmatprep.mubr.msk.bf16.mxu0 %vm1177_vm2, %v1176_v4 }
 0x598   :  { %1060 = vmatprep.subr.bf16.mxu0 %v1176_v4 }
 0x59b   :  { %1061 = vmatpush3.bf16.msra.mxu0 %v1247_v7 }
 0x59c   :  { %1074 = vmatprep.subr.bf16.mxu0 %v1176_v4 }
 0x669   :  { %v344_v63 = vpop.f32.mrb[0].mxu0 }
 0x66a   :  { %v350_v0 = vadd.f32 %v344_v63, %v1270_v12  ;;  %v1048_v1 = vpop.f32.mrb[1].mxu0 }
 0x66b   :  { %v347_v2 = vpop.f32.mrb[2].mxu0 }
 0x66c   :  { %1128 = vtanh.f32 %v350_v0  ;;  %v1049_v3 = vpop.f32.mrb[3].mxu0 }
 0x676   :  { %v1129_v6 = vpop.eup %1128 }
 0x677   :  { %356 = vrot.lane.b32.xlu0 %v1129_v6, %s1179_s3  ;;  %v352_v8 = vmul.f32 0.5, %v1129_v6 }
 0x679   :  { %v353_v9 = vadd.f32 0.5, %v352_v8 }
 0x67b   :  { %v354_v13 = vmul.f32 %v353_v9, %v290_v57 }
 0x6e9   :  { %v357_v10 = vpop.permute.xlu0 %356 }
 0x6ea   :  { %v359_v11 = vmul.f32 %v357_v10, %v353_v9 }
 0x6ec   :  { %361 = vrot.lane.b32.xlu1 %v359_v11, %s1180_s10 }
 0x75e   :  { %v362_v14 = vpop.permute.xlu1 %361 }
 0x75f   :  { %v364_v16 = vadd.f32 %v362_v14, %v354_v13 }
 0x761   :  { %1130 = vtanh.f32 %v364_v16 }
 0x76b   :  { %v1131_v17 = vpop.eup %1130 }
 0x76c   :  { %367 = vrot.lane.b32.xlu0 %v1131_v17, %s1179_s3 }
 0x7de   :  { %v368_v12 = vpop.permute.xlu0 %367 }
 0x7df   :  { %v1316_v18 = vmul.f32 %v368_v12, %v353_v9 }
 0x7e1   :  { %v377_v20 = vpack.c.bf16 %v1316_v18, %v1316_v18 }
 0x7e3   :  { %379 = vrot.lane.b32.xlu1 %v377_v20, %s1180_s10 }
 0x855   :  { %v380_v22 = vpop.permute.xlu1 %379 }
 0x856   :  { %1055 = vmatmul.mubr.msk.bf16.vlgmr.msra.gmra.mrb[16].mxu1 %vm159_vm3, %v380_v22 }
 0x857   :  { %1067 = vmatpush3.bf16.msra.mxu1 %v1232_v5  ;;  %1070 = vmatprep.mubr.msk.bf16.mxu1 %vm1177_vm2, %v1176_v4 }
 0x858   :  { %1068 = vmatprep.subr.bf16.mxu1 %v1176_v4 }
 0x85b   :  { %1069 = vmatpush3.bf16.msra.mxu1 %v1247_v7 }
 0x85c   :  { %1082 = vmatprep.subr.bf16.mxu1 %v1176_v4 }
 0x929   :  { %v418_v24 = vpop.f32.mrb[16].mxu1 }
 0x92a   :  { %v424_v26 = vadd.f32 %v418_v24, %v1272_v15  ;;  %v1056_v27 = vpop.f32.mrb[17].mxu1 }
 0x92b   :  { %v421_v28 = vpop.f32.mrb[18].mxu1 }
 0x92c   :  { %1132 = vtanh.f32 %v424_v26  ;;  %v1057_v29 = vpop.f32.mrb[19].mxu1 }
 0x936   :  { %v1133_v30 = vpop.eup %1132 }
 0x937   :  { %430 = vrot.lane.b32.xlu0 %v1133_v30, %s1179_s3  ;;  %v426_v31 = vmul.f32 0.5, %v1133_v30 }
 0x939   :  { %v427_v32 = vadd.f32 0.5, %v426_v31 }
 0x93b   :  { %v428_v35 = vmul.f32 %v427_v32, %v364_v16 }
 0x9a9   :  { %v431_v33 = vpop.permute.xlu0 %430 }
 0x9aa   :  { %v433_v34 = vmul.f32 %v431_v33, %v427_v32 }
 0x9ac   :  { %435 = vrot.lane.b32.xlu1 %v433_v34, %s1180_s10 }
 0xa1e   :  { %v436_v36 = vpop.permute.xlu1 %435 }
 0xa1f   :  { %v438_v37 = vadd.f32 %v436_v36, %v428_v35 }
 0xa21   :  { %1134 = vtanh.f32 %v438_v37 }
 0xa2b   :  { %v1135_v38 = vpop.eup %1134 }
 0xa2c   :  { %441 = vrot.lane.b32.xlu0 %v1135_v38, %s1179_s3 }
 0xa9e   :  { %v442_v15 = vpop.permute.xlu0 %441 }
 0xa9f   :  { %v1332_v39 = vmul.f32 %v442_v15, %v427_v32 }
 0xaa1   :  { %v447_v40 = vpack.c.bf16 %v1332_v39, %v1332_v39 }
 0xaa3   :  { %449 = vrot.lane.b32.xlu1 %v447_v40, %s1180_s10 }
 0xb15   :  { %v450_v41 = vpop.permute.xlu1 %449 }
 0xb16   :  { %1063 = vmatmul.mubr.msk.bf16.vlgmr.msra.gmra.mrb[4].mxu0 %vm159_vm3, %v450_v41 }
 0xb17   :  { %1075 = vmatpush3.bf16.msra.mxu0 %v1232_v5  ;;  %1078 = vmatprep.mubr.msk.bf16.mxu0 %vm1177_vm2, %v1176_v4 }
 0xb18   :  { %1076 = vmatprep.subr.bf16.mxu0 %v1176_v4 }
 0xb1b   :  { %1077 = vmatpush3.bf16.msra.mxu0 %v1247_v7 }
 0xbe9   :  { %v488_v43 = vpop.f32.mrb[4].mxu0 }
 0xbea   :  { %v494_v44 = vadd.f32 %v488_v43, %v1276_v21  ;;  %v1064_v45 = vpop.f32.mrb[5].mxu0 }
 0xbeb   :  { %v491_v46 = vpop.f32.mrb[6].mxu0 }
 0xbec   :  { %1136 = vtanh.f32 %v494_v44  ;;  %v1065_v47 = vpop.f32.mrb[7].mxu0 }
 0xbf6   :  { %v1137_v48 = vpop.eup %1136 }
 0xbf7   :  { %500 = vrot.lane.b32.xlu0 %v1137_v48, %s1179_s3  ;;  %v496_v49 = vmul.f32 0.5, %v1137_v48  ;;  %v1106_v48 = vld [vmem:[%s1465_s4 + $0x48] sm:$0xff]  }
 0xbf9   :  { %v497_v50 = vadd.f32 0.5, %v496_v49 }
 0xbfb   :  { %v498_v53 = vmul.f32 %v497_v50, %v438_v37 }
 0xc69   :  { %v501_v51 = vpop.permute.xlu0 %500 }
 0xc6a   :  { %v503_v52 = vmul.f32 %v501_v51, %v497_v50  ;;  %v1109_v51 = vld [vmem:[%s1465_s4 + $0x10] sm:$0xff]  }
 0xc6c   :  { %505 = vrot.lane.b32.xlu1 %v503_v52, %s1180_s10  ;;  %v1110_v52 = vld [vmem:[%s1465_s4 + $0x58] sm:$0xff]  }
 0xcde   :  { %v506_v54 = vpop.permute.xlu1 %505 }
 0xcdf   :  { %v508_v55 = vadd.f32 %v506_v54, %v498_v53  ;;  %v1111_v53 = vld [vmem:[%s1465_s4 + $0x18] sm:$0xff]  }
 0xce1   :  { %1138 = vtanh.f32 %v508_v55 }
 0xceb   :  { %v1139_v56 = vpop.eup %1138 }
 0xcec   :  { %511 = vrot.lane.b32.xlu0 %v1139_v56, %s1179_s3 }
 0xd5e   :  { %v512_v21 = vpop.permute.xlu0 %511 }
 0xd5f   :  { %v1347_v57 = vmul.f32 %v512_v21, %v497_v50  ;;  %v1108_v50 = vld [vmem:[%s1465_s4 + $0x50] sm:$0xff]  }
 0xd61   :  { %v520_v58 = vpack.c.bf16 %v1347_v57, %v1347_v57 }
 0xd63   :  { %522 = vrot.lane.b32.xlu1 %v520_v58, %s1180_s10 }
 0xdd5   :  { %v523_v59 = vpop.permute.xlu1 %522 }
 0xdd6   :  { %1071 = vmatmul.mubr.msk.bf16.vlgmr.msra.gmra.mrb[20].mxu1 %vm159_vm3, %v523_v59  ;;  %v1114_v59 = vld [vmem:[%s1465_s4 + $0x68] sm:$0xff]  }
 0xdd7   :  { %1083 = vmatpush3.bf16.msra.mxu1 %v1232_v5  ;;  %1086 = vmatprep.mubr.msk.bf16.mxu1 %vm1177_vm2, %v1176_v4 }
 0xdd8   :  { %1084 = vmatprep.subr.bf16.mxu1 %v1176_v4 }
 0xddb   :  { %1085 = vmatpush3.bf16.msra.mxu1 %v1247_v7 }
 0xea9   :  { %v561_v61 = vpop.f32.mrb[20].mxu1 }
 0xeaa   :  { %v567_v62 = vadd.f32 %v561_v61, %v1280_v25  ;;  %v1072_v63 = vpop.f32.mrb[21].mxu1 }
 0xeab   :  { %v564_v0 = vpop.f32.mrb[22].mxu1 }
 0xeac   :  { %1140 = vtanh.f32 %v567_v62  ;;  %v1073_v1 = vpop.f32.mrb[23].mxu1  ;;  %v1115_v62 = vld [vmem:[%s1465_s4 + $0x28] sm:$0xff]   ;;  %v1116_v0 = vld [vmem:[%s1465_s4 + $0x70] sm:$0xff]  }
 0xead   :  { %v1117_v1 = vld [vmem:[%s1465_s4 + $0x30] sm:$0xff]  }
 0xeb6   :  { %v1141_v2 = vpop.eup %1140 }
 0xeb7   :  { %573 = vrot.lane.b32.xlu0 %v1141_v2, %s1179_s3  ;;  %v569_v3 = vmul.f32 0.5, %v1141_v2  ;;  %v1118_v2 = vld [vmem:[%s1465_s4 + $0x78] sm:$0xff]  }
 0xeb9   :  { %v570_v6 = vadd.f32 0.5, %v569_v3  ;;  %v1119_v3 = vld [vmem:[%s1465_s4 + $0x38] sm:$0xff]  }
 0xebb   :  { %v571_v9 = vmul.f32 %v570_v6, %v508_v55  ;;  %v1112_v55 = vld [vmem:[%s1465_s4 + $0x60] sm:$0xff]  }
 0xf29   :  { %v574_v5 = vpop.permute.xlu0 %573 }
 0xf2a   :  { %v576_v8 = vmul.f32 %v574_v5, %v570_v6 }
 0xf2c   :  { %578 = vrot.lane.b32.xlu1 %v576_v8, %s1180_s10 }
 0xf9e   :  { %v579_v4 = vpop.permute.xlu1 %578 }
 0xf9f   :  { %v581_v10 = vadd.f32 %v579_v4, %v571_v9 }
 0xfa1   :  { %1142 = vtanh.f32 %v581_v10 }
 0xfab   :  { %v1143_v7 = vpop.eup %1142 }
 0xfac   :  { %584 = vrot.lane.b32.xlu0 %v1143_v7, %s1179_s3 }
0x101e   :  { %v585_v25 = vpop.permute.xlu0 %584 }
0x101f   :  { %v587_v11 = vmul.f32 %v585_v25, %v570_v6 }
0x1021   :  { %v593_v13 = vpack.c.bf16 %v587_v11, %v587_v11 }
0x1023   :  { %595 = vrot.lane.b32.xlu1 %v593_v13, %s1180_s10 }
0x1095   :  { %v596_v14 = vpop.permute.xlu1 %595 }
0x1096   :  { %1079 = vmatmul.mubr.msk.bf16.vlgmr.msra.gmra.mrb[8].mxu0 %vm159_vm3, %v596_v14 }
0x1169   :  { %v634_v16 = vpop.f32.mrb[8].mxu0 }
0x116a   :  { %v640_v17 = vadd.f32 %v634_v16, %v1274_v19  ;;  %v1080_v12 = vpop.f32.mrb[9].mxu0 }
0x116b   :  { %v637_v20 = vpop.f32.mrb[10].mxu0 }
0x116c   :  { %1144 = vtanh.f32 %v640_v17  ;;  %v1081_v22 = vpop.f32.mrb[11].mxu0 }
0x1176   :  { %v1145_v24 = vpop.eup %1144 }
0x1177   :  { %646 = vrot.lane.b32.xlu0 %v1145_v24, %s1179_s3  ;;  %v642_v26 = vmul.f32 0.5, %v1145_v24 }
0x1179   :  { %v643_v27 = vadd.f32 0.5, %v642_v26 }
0x117b   :  { %v644_v30 = vmul.f32 %v643_v27, %v581_v10 }
0x11e9   :  { %v647_v28 = vpop.permute.xlu0 %646 }
0x11ea   :  { %v649_v29 = vmul.f32 %v647_v28, %v643_v27 }
0x11ec   :  { %651 = vrot.lane.b32.xlu1 %v649_v29, %s1180_s10 }
0x125e   :  { %v652_v31 = vpop.permute.xlu1 %651 }
0x125f   :  { %v654_v32 = vadd.f32 %v652_v31, %v644_v30 }
0x1261   :  { %1146 = vtanh.f32 %v654_v32 }
0x126b   :  { %v1147_v33 = vpop.eup %1146 }
0x126c   :  { %657 = vrot.lane.b32.xlu0 %v1147_v33, %s1179_s3 }
0x12de   :  { %v658_v19 = vpop.permute.xlu0 %657 }
0x12df   :  { %v1368_v34 = vmul.f32 %v658_v19, %v643_v27 }
0x12e1   :  { %v666_v35 = vpack.c.bf16 %v1368_v34, %v1368_v34 }
0x12e3   :  { %668 = vrot.lane.b32.xlu1 %v666_v35, %s1180_s10 }
0x1355   :  { %v669_v36 = vpop.permute.xlu1 %668 }
0x1356   :  { %1087 = vmatmul.mubr.msk.bf16.vlgmr.msra.gmra.mrb[24].mxu1 %vm159_vm3, %v669_v36 }
0x1429   :  { %v707_v37 = vpop.f32.mrb[24].mxu1 }
0x142a   :  { %v713_v38 = vadd.f32 %v707_v37, %v1278_v23  ;;  %v1088_v15 = vpop.f32.mrb[25].mxu1 }
0x142b   :  { %v710_v40 = vpop.f32.mrb[26].mxu1 }
0x142c   :  { %1148 = vtanh.f32 %v713_v38  ;;  %v1089_v41 = vpop.f32.mrb[27].mxu1 }
0x1436   :  { %v1149_v43 = vpop.eup %1148 }
0x1437   :  { %719 = vrot.lane.b32.xlu0 %v1149_v43, %s1179_s3  ;;  %v715_v23 = vmul.f32 0.5, %v1149_v43 }
0x1439   :  { %v716_v44 = vadd.f32 0.5, %v715_v23 }
0x143b   :  { %516 = vrot.lane.b32.xlu0 %v1347_v57, %s1180_s10  ;;  %v717_v54 = vmul.f32 %v716_v44, %v654_v32  ;;  %v1113_v57 = vld [vmem:[%s1465_s4 + $0x20] sm:$0xff]  }
0x143f   :  { %589 = vrot.lane.b32.xlu0 %v587_v11, %s1179_s3  ;;  %v948_v11 = vld [vmem:[%s1466_s5] ss:$0 sm:$0xff] }
0x1443   :  { %298 = vrot.lane.b32.xlu0 %v1300_v60, %s1179_s3  ;;  %v1104_v60 = vld [vmem:[%s1465_s4 + $0x40] sm:$0xff]  }
0x1444   :  { %994 = vmatprep.subr.bf16.mxu0 %v1104_v60 }
0x1447   :  { %372 = vrot.lane.b32.xlu0 %v1316_v18, %s1181_s11  ;;  %v1105_v18 = vld [vmem:[%s1465_s4] sm:$0xff]  }
0x1448   :  { %995 = vmatpush3.bf16.msra.mxu0 %v1105_v18 }
0x1449   :  { %996 = vmatprep.subr.bf16.mxu0 %v1106_v48 }
0x14a9   :  { %v720_v45 = vpop.permute.xlu0 %719 }
0x14aa   :  { %v722_v46 = vmul.f32 %v720_v45, %v716_v44 }
0x14ac   :  { %724 = vrot.lane.b32.xlu1 %v722_v46, %s1180_s10 }
0x14ad   :  { %v517_v47 = vpop.permute.xlu0 %516 }
0x14ae   :  { %519 = vst.msk [vmem:[#allocation2 + $0x8] sm:$0xff] %vm159_vm3, %v517_v47 }
0x14b0   :  { %225 = vrot.lane.b32.xlu1 %v1285_v42, %s1180_s10  ;;  %v1107_v42 = vld [vmem:[%s1465_s4 + $0x8] sm:$0xff]  }
0x14b1   :  { %v590_v49 = vpop.permute.xlu0 %589  ;;  %997 = vmatpush3.bf16.msra.mxu0 %v1107_v42 }
0x14b2   :  { %592 = vst.msk [vmem:[#allocation2 + $0x8] sm:$0xff] %vm301_vm4, %v590_v49  ;;  %998 = vmatprep.subr.bf16.mxu0 %v1108_v50 }
0x14b5   :  { %999 = vmatpush3.bf16.msra.mxu0 %v1109_v51  ;;  %v299_v56 = vpop.permute.xlu0 %298 }
0x14b6   :  { %1000 = vmatprep.subr.bf16.mxu0 %v1110_v52 }
0x14b9   :  { %1001 = vmatpush3.bf16.msra.mxu0 %v1111_v53  ;;  %v373_v63 = vpop.permute.xlu0 %372 }
0x14ba   :  { %1002 = vmatprep.subr.bf16.mxu0 %v1112_v55 }
0x14bd   :  { %1003 = vmatpush3.bf16.msra.mxu0 %v1113_v57 }
0x14be   :  { %1004 = vmatprep.subr.bf16.mxu0 %v1114_v59 }
0x14c1   :  { %1005 = vmatpush3.bf16.msra.mxu0 %v1115_v62 }
0x14c2   :  { %1006 = vmatprep.subr.bf16.mxu0 %v1116_v0 }
0x14c5   :  { %1007 = vmatpush3.bf16.msra.mxu0 %v1117_v1 }
0x14c6   :  { %1008 = vmatprep.subr.bf16.mxu0 %v1118_v2 }
0x14c9   :  { %1009 = vmatpush3.bf16.msra.mxu0 %v1119_v3 }
0x151e   :  { %v725_v21 = vpop.permute.xlu1 %724 }
0x151f   :  { %v727_v58 = vadd.f32 %v725_v21, %v717_v54 }
0x1521   :  { %1150 = vtanh.f32 %v727_v58 }
0x1522   :  { %v226_v61 = vpop.permute.xlu1 %225 }
0x1523   :  { %228 = vst.msk [vmem:[#allocation2] sm:$0xff] %vm159_vm3, %v226_v61 }
0x1524   :  { %302 = vst.msk [vmem:[#allocation2] sm:$0xff] %vm301_vm4, %v299_v56 }
0x1525   :  { %376 = vst.msk [vmem:[#allocation2] sm:$0xff] %vm375_vm5, %v373_v63 }
0x1526   :  { %446 = vst.msk [vmem:[#allocation2] sm:$0xff] %vm445_vm6, %v1332_v39 }
0x152b   :  { %v1151_v6 = vpop.eup %1150 }
0x152c   :  { %730 = vrot.lane.b32.xlu1 %v1151_v6, %s1179_s3 }
0x152d   :  { %v735_v39 = vld [vmem:[#allocation2] sm:$0xff] }
0x152e   :  { %v737_v7 = vpack.c.bf16 %v735_v39, %v735_v39 }
0x1530   :  { %662 = vrot.lane.b32.xlu1 %v1368_v34, %s1181_s11  ;;  %s1182_s11 = smov [#allocation3]  }
0x1531   :  { %s922_s18 = sshll.u32 %s1182_s11, 4  ;;  %s923_s18 = int_to_ptr.vmem [resolvable:$true] %s922_s18 }
0x1532   :  { %s1152_s19 = scalar_lea.vmem %s923_s18, 128  ;;  %p1157_p1 = scmp.lt.s32.totalorder %s923_s18, %s923_s18 }
0x1533   :  { %p1153_p0 = scmp.ne.s32.totalorder %s923_s18, %s1152_s19  ;;  %p1158_p2 = scmp.lt.s32.totalorder %s1152_s19, %s1152_s19 }
0x1535   :  { %p1159_p3 = por %p1158_p2, %p1157_p1 }
0x1537   :  { %p1160_p4 = pnand %p1159_p3, %p1153_p0 }
0x159e   :  { %v731_v5 = vpop.permute.xlu1 %730 }
0x159f   :  { %v733_v8 = vmul.f32 %v731_v5, %v716_v44 }
0x15a2   :  { %v663_v9 = vpop.permute.xlu1 %662 }
0x15a3   :  { %665 = vst.msk [vmem:[#allocation2 + $0x8] sm:$0xff] %vm375_vm5, %v663_v9 }
0x15a4   :  { %734 = vst.msk [vmem:[#allocation2 + $0x8] sm:$0xff] %vm445_vm6, %v733_v8 }
0x15ab   :  { %v736_v4 = vld [vmem:[#allocation2 + $0x8] sm:$0xff] }
0x15ac   :  { %v738_v10 = vpack.c.bf16 %v736_v4, %v736_v4 }
0x15ae   :  { %906 = vmatprep.mubr.bf16.mxu0 %v738_v10 }
0x15af   :  { %907 = vmatmul.mubr.bf16.vlgmr.msra.gmra.mrb[12].mxu0 %v737_v7 }
0x1682   :  { %v1010_v25 = vpop.f32.mrb[12].mxu0 }
0x1683   :  { %v1011_v13 = vpop.f32.mrb[13].mxu0 }
0x1684   :  { %v1012_v14 = vadd.f32 %v1011_v13, %v1010_v25  ;;  %v1013_v16 = vpop.f32.mrb[14].mxu0 }
0x1685   :  { %v1014_v17 = vpop.f32.mrb[15].mxu0 }
0x1686   :  { %v909_v12 = vadd.f32 %v1012_v14, %v948_v11 }
0x1688   :  { %915 = vst.msk [vmem:[#allocation3] sm:$0xff] %vm914_vm7, %v909_v12 }
0x1689   :  { %1163 = shalt.err (!%p1160_p4)
}
0x168a   :  { %s1164_s5 = scalar_lea.hbm %s1467_s6, 128 }
0x168b   :  { %p1165_p5 = scmp.ne.s32.totalorder %s1467_s6, %s1164_s5  ;;  %p1168_p6 = scmp.lt.u32.totalorder %s1164_s5, %s1467_s6 }
0x168d   :  { %p1170_p7 = pnand %p1168_p6, %p1165_p5 }
0x168f   :  { %1173 = shalt.err (!%p1170_p7)
}
0x1690   :  { %925 = dma.vmem_to_hbm [thread:$0]  %s923_s18, 128, %s1467_s6, [#allocation4]  }
0x1691   :  { %1174 = dma.done.wait [#allocation4], 128  }
0x1692   :  { %1175 = vsyncadd [#allocation4], 4294967168 }
0x1693   :  { %929 = vsyncpa [#allocation4], 1 }

</bundles_post_ra>
